<compile_context>
chip_gen: v7x
topology: tpu7x:2x2x1
jax: 0.10.0
libtpu: 0.0.40
codegen_flags: <defaults>
</compile_context>

<pallas_src>
import jax
import jax.numpy as jnp
from jax.experimental import pallas as pl
from jax.experimental.pallas import tpu as pltpu


def _round_up(n, m):
    return ((n + m - 1) // m) * m


def _mlp_kernel(xt_ref, w1_ref, b1_ref, w2_ref, b2_ref, w3_ref, b3_ref, o_ref):
    # xt_ref: (D, TB) tile of x^T ; weights/biases are whole-array resident tiles.
    xt = xt_ref[...]
    w1, w2, w3 = w1_ref[...], w2_ref[...], w3_ref[...]
    b1 = b1_ref[...]   # (H, 1) f32 -> broadcasts over the lane (batch) axis
    b2 = b2_ref[...]   # (H, 1) f32
    b3 = b3_ref[...]   # (1, 1) f32

    # Layer 1: (H, D) @ (D, TB) -> (H, TB), f32 accumulation on the MXU.
    h1 = jnp.tanh(jnp.dot(w1, xt, preferred_element_type=jnp.float32) + b1)
    h1 = h1.astype(w2.dtype)
    # Layer 2: (H, H) @ (H, TB) -> (H, TB)
    h2 = jnp.tanh(jnp.dot(w2, h1, preferred_element_type=jnp.float32) + b2)
    h2 = h2.astype(w3.dtype)
    # Output layer: (1, H) @ (H, TB) -> (1, TB)  (lane-dense row, unmasked stores)
    y = jnp.dot(w3, h2, preferred_element_type=jnp.float32) + b3
    o_ref[...] = y.astype(o_ref.dtype)


def deep_score_network_t(xt, params, *, block_rows=8192, core_parallel=False):
    """Feature-major entry point (no wrapper copies).

    xt: (input_dim, B) = x^T.  Its dtype is the storage/matmul dtype
        (f32 everywhere; bf16 is worthwhile on v5e/v6e to halve the HBM read
        stream — the MXU takes bf16 natively on all generations and both tanh
        and accumulation stay f32 inside the kernel).
    Returns (B, 1) float32.
    """
    w1, b1, w2, b2, w3, b3 = params
    D, B = xt.shape
    H = w1.shape[0]

    # Weights follow x's storage dtype (tiny one-time cast); biases stay f32.
    w1, w2, w3 = (w.astype(xt.dtype) for w in (w1, w2, w3))
    b1, b2, b3 = (b.astype(jnp.float32) for b in (b1, b2, b3))

    # Batch tile: one full-extent block for small B, otherwise balanced tiles
    # rounded up to 128 lanes (keeps ragged-tail waste < 128 columns / tile).
    if B <= max(block_rows, 128):
        TB = B
        num_blocks = 1
    else:
        nb = pl.cdiv(B, block_rows)
        TB = _round_up(pl.cdiv(B, nb), 128)
        num_blocks = pl.cdiv(B, TB)
    # Ragged tail (B % TB != 0): Pallas clamps the last input DMA and drops
    # out-of-bounds output writes, so no jnp.pad copy is needed.  Garbage in
    # the padded columns stays per-column and is discarded.

    itemsize = jnp.dtype(xt.dtype).itemsize
    cost = pl.CostEstimate(
        flops=2 * B * (D * H + H * H + H),
        transcendentals=2 * B * H,
        bytes_accessed=itemsize * (B * D + D * H + H * H + H)
        + 4 * (2 * H + 1) + 4 * B,
    )

    # Weights/biases: full-array blocks whose index_map ignores the grid step,
    # so they are fetched once and stay resident in VMEM.
    def resident(a):
        return pl.BlockSpec(a.shape, lambda i: (0, 0))

    sem = (pltpu.CORE_PARALLEL,) if core_parallel else ("parallel",)

    out = pl.pallas_call(
        _mlp_kernel,
        out_shape=jax.ShapeDtypeStruct((1, B), jnp.float32),
        grid=(num_blocks,),
        in_specs=[
            pl.BlockSpec((D, TB), lambda i: (0, i)),   # x^T batch tiles
            resident(w1), resident(b1),
            resident(w2), resident(b2),
            resident(w3), resident(b3),
        ],
        out_specs=pl.BlockSpec((1, TB), lambda i: (0, i)),  # lane-dense output
        compiler_params=pltpu.CompilerParams(
            dimension_semantics=sem,
            vmem_limit_bytes=32 * 1024 * 1024,
        ),
        cost_estimate=cost,
    )(xt, w1, b1, w2, b2, w3, b3)

    # (1, B) -> (B, 1) is a pure reshape (no data movement).
    return out.reshape(B, 1)


def deep_score_network(x, params, *, block_rows=8192, dtype=None,
                       core_parallel=False):
    """PyTorch-layout entry point: x (B, input_dim) -> (B, 1) float32.

    Performs a single transpose pass to feature-major before the kernel
    (prefer deep_score_network_t with (D, B) input to avoid even that).
    dtype: optional storage dtype for x/weights (bf16 pays off on v5e/v6e;
    on v7x the kernel is tanh/EUP-bound so it buys little).  Biases and
    accumulation are always f32.
    """
    xt = x.T
    if dtype is not None:
        xt = xt.astype(dtype)   # fuses with the transpose under jit
    return deep_score_network_t(xt, params, block_rows=block_rows,
                                core_parallel=core_parallel)


def init_params(key, input_dim, hidden_dim=20):
    """nn.Linear-style init U(-1/sqrt(fan_in), 1/sqrt(fan_in)).

    Weights in PyTorch layout (out_features, in_features); biases as (out, 1).
    """
    ks = jax.random.split(key, 6)

    def lin(kw, kb, fan_in, fan_out):
        bound = 1.0 / (fan_in ** 0.5)
        w = jax.random.uniform(kw, (fan_out, fan_in), jnp.float32, -bound, bound)
        b = jax.random.uniform(kb, (fan_out, 1), jnp.float32, -bound, bound)
        return w, b

    w1, b1 = lin(ks[0], ks[1], input_dim, hidden_dim)
    w2, b2 = lin(ks[2], ks[3], hidden_dim, hidden_dim)
    w3, b3 = lin(ks[4], ks[5], hidden_dim, 1)
    return (w1, b1, w2, b2, w3, b3)


def reference(x, params):
    w1, b1, w2, b2, w3, b3 = params
    h1 = jnp.tanh(x @ w1.T + b1.T)
    h2 = jnp.tanh(h1 @ w2.T + b2.T)
    return h2 @ w3.T + b3.T


if __name__ == "__main__":
    key = jax.random.PRNGKey(0)
    k_x, k_p, k_x2 = jax.random.split(key, 3)

    input_dim, hidden_dim = 16, 20
    params = init_params(k_p, input_dim, hidden_dim)

    # Small batch: single full-extent block.
    x_small = jax.random.normal(k_x, (8, input_dim), jnp.float32)
    out_small = deep_score_network(x_small, params)
    jax.block_until_ready(out_small)
    ref_small = reference(x_small, params)
    assert out_small.shape == (8, 1)
    assert jnp.allclose(out_small, ref_small, atol=1e-5, rtol=1e-5), "small mismatch"

    # Non-tile-aligned batch, multiple tiles: exercises the ragged tail
    # (no pad copy) and the balanced-TB selection.
    x_big = jax.random.normal(k_x2, (1100, input_dim), jnp.float32)
    out_big = deep_score_network(x_big, params, block_rows=256)
    jax.block_until_ready(out_big)
    ref_big = reference(x_big, params)
    assert out_big.shape == (1100, 1)
    assert jnp.allclose(out_big, ref_big, atol=1e-5, rtol=1e-5), "big mismatch"

    # Feature-major API: zero wrapper copies (transpose done here only to build
    # the test input; a feature-major producer would skip it entirely).
    out_t = deep_score_network_t(x_big.T, params, block_rows=256)
    jax.block_until_ready(out_t)
    assert out_t.shape == (1100, 1)
    assert jnp.allclose(out_t, ref_big, atol=1e-5, rtol=1e-5), "feature-major mismatch"

    # bf16 storage for x/weights (v5e/v6e bandwidth lever); biases/accum stay f32.
    out_bf16 = deep_score_network(x_big, params, block_rows=256, dtype=jnp.bfloat16)
    jax.block_until_ready(out_bf16)
    assert jnp.allclose(out_bf16, ref_big, atol=5e-2, rtol=5e-2), "bf16 mismatch"

    # TODO(synk): on v7x, verify in the trace that the batch grid splits across
    # both TensorCores; if not, call with core_parallel=True.

    print("KERNEL_OK")
</pallas_src>

<mosaic_0001>
module attributes {stable_mosaic.version = 11 : i64} {
  func.func @_mlp_kernel(%arg0: i32, %arg1: memref<16x8xf32, #tpu.memory_space<vmem>>, %arg2: memref<20x16xf32, #tpu.memory_space<vmem>>, %arg3: memref<20x1xf32, #tpu.memory_space<vmem>>, %arg4: memref<20x20xf32, #tpu.memory_space<vmem>>, %arg5: memref<20x1xf32, #tpu.memory_space<vmem>>, %arg6: memref<1x20xf32, #tpu.memory_space<vmem>>, %arg7: memref<1x1xf32, #tpu.memory_space<vmem>>, %arg8: memref<1x8xf32, #tpu.memory_space<vmem>>) attributes {dimension_semantics = [#tpu.dimension_semantics<parallel>], iteration_bounds = array<i64: 1>, scalar_prefetch = 0 : i64, scratch_operands = 0 : i64, tpu.core_type = #tpu.core_type<tc>, window_params = [{transform_indices = @transform_0, window_bounds = array<i64: 16, 8>}, {pipeline_mode = #tpu.pipeline_mode<synchronous>, transform_indices = @transform_1, window_bounds = array<i64: 20, 16>}, {pipeline_mode = #tpu.pipeline_mode<synchronous>, transform_indices = @transform_2, window_bounds = array<i64: 20, 1>}, {pipeline_mode = #tpu.pipeline_mode<synchronous>, transform_indices = @transform_3, window_bounds = array<i64: 20, 20>}, {pipeline_mode = #tpu.pipeline_mode<synchronous>, transform_indices = @transform_4, window_bounds = array<i64: 20, 1>}, {pipeline_mode = #tpu.pipeline_mode<synchronous>, transform_indices = @transform_5, window_bounds = array<i64: 1, 20>}, {pipeline_mode = #tpu.pipeline_mode<synchronous>, transform_indices = @transform_6, window_bounds = array<i64: 1, 1>}, {transform_indices = @transform_7, window_bounds = array<i64: 1, 8>}]} {
    %c0 = arith.constant 0 : index
    %c0_0 = arith.constant 0 : index
    %0 = vector.load %arg1[%c0, %c0_0] : memref<16x8xf32, #tpu.memory_space<vmem>>, vector<16x8xf32>
    %c0_1 = arith.constant 0 : index
    %c0_2 = arith.constant 0 : index
    %1 = vector.load %arg2[%c0_1, %c0_2] : memref<20x16xf32, #tpu.memory_space<vmem>>, vector<20x16xf32>
    %c0_3 = arith.constant 0 : index
    %c0_4 = arith.constant 0 : index
    %2 = vector.load %arg4[%c0_3, %c0_4] : memref<20x20xf32, #tpu.memory_space<vmem>>, vector<20x20xf32>
    %c0_5 = arith.constant 0 : index
    %c0_6 = arith.constant 0 : index
    %3 = vector.load %arg6[%c0_5, %c0_6] : memref<1x20xf32, #tpu.memory_space<vmem>>, vector<1x20xf32>
    %c0_7 = arith.constant 0 : index
    %c0_8 = arith.constant 0 : index
    %4 = vector.load %arg3[%c0_7, %c0_8] : memref<20x1xf32, #tpu.memory_space<vmem>>, vector<20x1xf32>
    %c0_9 = arith.constant 0 : index
    %c0_10 = arith.constant 0 : index
    %5 = vector.load %arg5[%c0_9, %c0_10] : memref<20x1xf32, #tpu.memory_space<vmem>>, vector<20x1xf32>
    %c0_11 = arith.constant 0 : index
    %c0_12 = arith.constant 0 : index
    %6 = vector.load %arg7[%c0_11, %c0_12] : memref<1x1xf32, #tpu.memory_space<vmem>>, vector<1x1xf32>
    %cst = arith.constant dense<0.000000e+00> : vector<20x8xf32>
    %7 = tpu.matmul %1, %0, %cst {dimension_numbers = #tpu.dot_dimension_numbers<[1], [0], [0], [1], [0, 0, 1, 1], [], []>} : vector<20x16xf32>, vector<16x8xf32>, vector<20x8xf32> -> vector<20x8xf32>
    %8 = vector.broadcast %4 : vector<20x1xf32> to vector<20x8xf32>
    %9 = arith.addf %7, %8 : vector<20x8xf32>
    %10 = math.tanh %9 : vector<20x8xf32>
    %cst_13 = arith.constant dense<0.000000e+00> : vector<20x8xf32>
    %11 = tpu.matmul %2, %10, %cst_13 {dimension_numbers = #tpu.dot_dimension_numbers<[1], [0], [0], [1], [0, 0, 1, 1], [], []>} : vector<20x20xf32>, vector<20x8xf32>, vector<20x8xf32> -> vector<20x8xf32>
    %12 = vector.broadcast %5 : vector<20x1xf32> to vector<20x8xf32>
    %13 = arith.addf %11, %12 : vector<20x8xf32>
    %14 = math.tanh %13 : vector<20x8xf32>
    %cst_14 = arith.constant dense<0.000000e+00> : vector<1x8xf32>
    %15 = tpu.matmul %3, %14, %cst_14 {dimension_numbers = #tpu.dot_dimension_numbers<[1], [0], [0], [1], [0, 0, 1, 1], [], []>} : vector<1x20xf32>, vector<20x8xf32>, vector<1x8xf32> -> vector<1x8xf32>
    %16 = vector.broadcast %6 : vector<1x1xf32> to vector<1x8xf32>
    %17 = arith.addf %15, %16 : vector<1x8xf32>
    %c0_15 = arith.constant 0 : index
    %c0_16 = arith.constant 0 : index
    %18 = vector.load %arg8[%c0_15, %c0_16] : memref<1x8xf32, #tpu.memory_space<vmem>>, vector<1x8xf32>
    tpu.vector_store %arg8[%c0_15, %c0_16], %17 {strides = array<i32>} : memref<1x8xf32, #tpu.memory_space<vmem>>, vector<1x8xf32>,
    return
  }
  func.func @transform_0(%arg0: i32) -> (i32, i32) {
    %c0_i32 = arith.constant 0 : i32
    %c0_i32_0 = arith.constant 0 : i32
    return %c0_i32, %arg0 : i32, i32
  }
  func.func @transform_1(%arg0: i32) -> (i32, i32) {
    %c0_i32 = arith.constant 0 : i32
    %c0_i32_0 = arith.constant 0 : i32
    %c0_i32_1 = arith.constant 0 : i32
    return %c0_i32, %c0_i32_0 : i32, i32
  }
  func.func @transform_2(%arg0: i32) -> (i32, i32) {
    %c0_i32 = arith.constant 0 : i32
    %c0_i32_0 = arith.constant 0 : i32
    %c0_i32_1 = arith.constant 0 : i32
    return %c0_i32, %c0_i32_0 : i32, i32
  }
  func.func @transform_3(%arg0: i32) -> (i32, i32) {
    %c0_i32 = arith.constant 0 : i32
    %c0_i32_0 = arith.constant 0 : i32
    %c0_i32_1 = arith.constant 0 : i32
    return %c0_i32, %c0_i32_0 : i32, i32
  }
  func.func @transform_4(%arg0: i32) -> (i32, i32) {
    %c0_i32 = arith.constant 0 : i32
    %c0_i32_0 = arith.constant 0 : i32
    %c0_i32_1 = arith.constant 0 : i32
    return %c0_i32, %c0_i32_0 : i32, i32
  }
  func.func @transform_5(%arg0: i32) -> (i32, i32) {
    %c0_i32 = arith.constant 0 : i32
    %c0_i32_0 = arith.constant 0 : i32
    %c0_i32_1 = arith.constant 0 : i32
    return %c0_i32, %c0_i32_0 : i32, i32
  }
  func.func @transform_6(%arg0: i32) -> (i32, i32) {
    %c0_i32 = arith.constant 0 : i32
    %c0_i32_0 = arith.constant 0 : i32
    %c0_i32_1 = arith.constant 0 : i32
    return %c0_i32, %c0_i32_0 : i32, i32
  }
  func.func @transform_7(%arg0: i32) -> (i32, i32) {
    %c0_i32 = arith.constant 0 : i32
    %c0_i32_0 = arith.constant 0 : i32
    return %c0_i32, %arg0 : i32, i32
  }
}

</mosaic_0001>

<bundles_post_ra>
// kernel: tpu_custom_call.1
= control target key start
LH: loop header
LB: loop body
LE: loop exit
PB: predicated region body
PF: predicated region fallthrough
CT: control target
= control target key end

     0   :  { %s609_s0 = inlined_call_operand.vmem [shape: f32[16,8], index: 0, kind: input, shape index: {}]   ;;  %s610_s1 = inlined_call_operand.vmem [shape: f32[20,16], index: 1, kind: input, shape index: {}]   ;;  %s611_s2 = inlined_call_operand.vmem [shape: f32[20,1], index: 2, kind: input, shape index: {}]   ;;  %s612_s3 = inlined_call_operand.vmem [shape: f32[20,20], index: 3, kind: input, shape index: {}]   ;;  %s613_s4 = inlined_call_operand.vmem [shape: f32[20,1], index: 4, kind: input, shape index: {}]   ;;  %s614_s5 = inlined_call_operand.vmem [shape: f32[1,20], index: 5, kind: input, shape index: {}]   ;;  %s615_s6 = inlined_call_operand.<no memory space> [shape: f32[1,1], index: 6, kind: input, shape index: {}]   ;;  %s616_s7 = inlined_call_operand.hbm [shape: f32[1,8], index: 7, kind: output, shape index: {}]  }
   0x1   :  { %v12_v0 = vstv %s615_s6 }
   0x2   :  { %13 = vst [vmem:[#allocation2] sm:$0x1] %v12_v0 }
   0x3   :  { %v29_v1 = vld [vmem:[%s609_s0] sm:$0xff]  ;;  %v30_v2 = vld [vmem:[%s609_s0 + $0x8] sm:$0xff]  ;;  %v479_v3 = vmov 0.0|0.0   ;;  %vm480_vm0 = vmmov 0   ;;  %v481_v5 = vmov 0.0   ;;  %v482_v7 = vmov 0  }
   0x4   :  { %427 = vmatprep.subr.bf16.mxu0 %v479_v3  ;;  %v428_v4 = vpack.c.bf16 %v30_v2, %v29_v1  ;;  %394 = vmatprep.mubr.msk.f32.mxu0 %vm480_vm0, %v481_v5  ;;  %v38_v6 = vld [vmem:[%s611_s2] sm:$0xff]  ;;  %vm60_vm1 = vcmask 130048   ;;  %v40_v9 = vld [vmem:[%s611_s2 + $0x10] sm:$0xf]  ;;  %v39_v10 = vld [vmem:[%s611_s2 + $0x8] sm:$0xff] }
   0x5   :  { %441 = vset.pattern.permute.xlu0 %v482_v7  ;;  %442 = vset.pattern.permute.xlu1 %v482_v7  ;;  %v31_v8 = vld [vmem:[%s610_s1] sm:$0xff] }
   0x6   :  { %429 = vmatpush3.bf16.msra.mxu0 %v428_v4  ;;  %47 = vperm.xlu0 %441, %v38_v6  }
   0x7   :  { %57 = vperm.xlu1 %442, %v40_v9   ;;  %430 = vmatprep.subr.bf16.mxu1 %v479_v3 }
   0x8   :  { %14 = vsyncpa [#allocation4], 0  ;;  %v41_v11 = vld [vmem:[%s613_s4] sm:$0xff]  ;;  %409 = vmatprep.mubr.msk.f32.mxu1 %vm480_vm0, %v481_v5  ;;  %433 = vmatprep.subr.bf16.mxu0 %v479_v3  ;;  %v32_v12 = vld [vmem:[%s610_s1 + $0x8] sm:$0xff]  ;;  %vm178_vm2 = vcmask 1043456   ;;  %vm168_vm3 = vcmask 162816   ;;  %v270_v53 = vlaneseq }
   0x9   :  { %395 = vmatmul.mubr.msk.f32.vlgmr.msra.gmra.mrb[0].mxu0 %vm60_vm1, %v31_v8  ;;  %v42_v13 = vld [vmem:[%s613_s4 + $0x8] sm:$0xff]  ;;  %v43_v14 = vld [vmem:[%s613_s4 + $0x10] sm:$0xf]  ;;  %v44_v16 = vld [vmem:[#allocation2] sm:$0x1]  ;;  %s483_s27 = smov [#allocation3]  }
   0xa   :  { %397 = vmatprep.mubr.msk.f32.mxu0 %vm480_vm0, %v481_v5  ;;  %52 = vperm.xlu0 %441, %v39_v10   ;;  %v33_v15 = vld [vmem:[%s610_s1 + $0x10] sm:$0xf]  ;;  %v34_v33 = vld [vmem:[%s612_s3] sm:$0xff]  ;;  %v35_v34 = vld [vmem:[%s612_s3 + $0x8] sm:$0xff]  ;;  %v271_v54 = vshrl.u32 %v270_v53, 7  ;;  %s358_s28 = sshll.u32 %s483_s27, 4  ;;  %s359_s28 = int_to_ptr.vmem [resolvable:$true] %s358_s28 }
   0xb   :  { %155 = vperm.xlu1 %442, %v41_v11   ;;  %v36_v35 = vld [vmem:[%s612_s3 + $0x10] sm:$0xf]  ;;  %v37_v51 = vld [vmem:[%s614_s5] sm:$0x1]  ;;  %vm350_vm4 = vcmask 57344   ;;  %s455_s29 = scalar_lea.vmem %s359_s28, 16  ;;  %p460_p1 = scmp.lt.s32.totalorder %s359_s28, %s359_s28 }
   0xc   :  { %v272_v55 = vsub.s32 0, %v271_v54  ;;  %p456_p0 = scmp.ne.s32.totalorder %s359_s28, %s455_s29  ;;  %s459_s5 = scalar_lea.vmem %s359_s28, 32 }
   0xd   :  { %398 = vmatmul.mubr.msk.f32.gmra.mrb[2].mxu0 %vm60_vm1, %v32_v12  ;;  %p461_p2 = scmp.lt.s32.totalorder %s459_s5, %s455_s29 }
   0xe   :  { %400 = vmatprep.mubr.msk.f32.mxu0 %vm480_vm0, %v481_v5  ;;  %160 = vperm.xlu0 %441, %v42_v13  }
   0xf   :  { %165 = vperm.xlu1 %442, %v43_v14   ;;  %p462_p3 = por %p461_p2, %p460_p1 }
  0x11   :  { %401 = vmatmul.mubr.msk.f32.gmra.mrb[4].mxu0 %vm60_vm1, %v33_v15  ;;  %p463_p4 = pnand %p462_p3, %p456_p0 }
  0x12   :  { %267 = vperm.xlu0 %441, %v44_v16   ;;  %424 = vmatprep.mubr.msk.f32.mxu0 %vm480_vm0, %v481_v5 }
  0x85   :  { %v48_v17 = vpop.permute.xlu0 %47 }
  0x86   :  { %v58_v25 = vpop.permute.xlu1 %57 }
  0x89   :  { %v53_v21 = vpop.permute.xlu0 %52 }
  0x8a   :  { %v156_v37 = vpop.permute.xlu1 %155 }
  0x8d   :  { %v161_v40 = vpop.permute.xlu0 %160 }
  0x8e   :  { %v166_v44 = vpop.permute.xlu1 %165 }
  0x91   :  { %v268_v56 = vpop.permute.xlu0 %267 }
  0x92   :  { %v273_v57 = vrot.slane %v268_v56, %v272_v55 }
  0xdc   :  { %v136_v18 = vpop.f32.mrb[0].mxu0 }
  0xdd   :  { %v396_v19 = vpop.f32.mrb[1].mxu0  ;;  %v137_v20 = vadd.f32 %v136_v18, %v48_v17 }
  0xdf   :  { %443 = vtanh.f32 %v137_v20 }
  0xe0   :  { %v141_v22 = vpop.f32.mrb[2].mxu0 }
  0xe1   :  { %v142_v23 = vadd.f32 %v141_v22, %v53_v21  ;;  %v399_v24 = vpop.f32.mrb[3].mxu0 }
  0xe3   :  { %445 = vtanh.f32 %v142_v23 }
  0xe4   :  { %v146_v26 = vpop.f32.mrb[4].mxu0 }
  0xe5   :  { %v147_v27 = vadd.f32 %v146_v26, %v58_v25  ;;  %v402_v28 = vpop.f32.mrb[5].mxu0 }
  0xe7   :  { %447 = vtanh.f32 %v147_v27 }
  0xe9   :  { %v444_v29 = vpop.eup %443 }
  0xed   :  { %v446_v30 = vpop.eup %445 }
  0xee   :  { %v431_v31 = vpack.c.bf16 %v446_v30, %v444_v29 }
  0xf0   :  { %432 = vmatpush3.bf16.msra.mxu1 %v431_v31 }
  0xf1   :  { %v448_v32 = vpop.eup %447  ;;  %407 = vmatprep.subr.mxu1 %v481_v5 }
  0xf4   :  { %408 = vmatpush3.msk.msra.mxu1 %vm178_vm2, %v448_v32 }
  0xf5   :  { %410 = vmatmul.mubr.msk.f32.vlgmr.msra.gmra.mrb[0].mxu1 %vm168_vm3, %v34_v33 }
  0xf6   :  { %412 = vmatprep.mubr.msk.f32.mxu1 %vm480_vm0, %v481_v5 }
  0xf9   :  { %413 = vmatmul.mubr.msk.f32.gmra.mrb[2].mxu1 %vm168_vm3, %v35_v34 }
  0xfa   :  { %415 = vmatprep.mubr.msk.f32.mxu1 %vm480_vm0, %v481_v5 }
  0xfd   :  { %416 = vmatmul.mubr.msk.f32.gmra.mrb[4].mxu1 %vm168_vm3, %v36_v35 }
 0x1c8   :  { %v248_v36 = vpop.f32.mrb[0].mxu1 }
 0x1c9   :  { %v411_v38 = vpop.f32.mrb[1].mxu1  ;;  %v249_v39 = vadd.f32 %v248_v36, %v156_v37 }
 0x1cb   :  { %449 = vtanh.f32 %v249_v39 }
 0x1cc   :  { %v253_v41 = vpop.f32.mrb[2].mxu1 }
 0x1cd   :  { %v254_v42 = vadd.f32 %v253_v41, %v161_v40  ;;  %v414_v43 = vpop.f32.mrb[3].mxu1 }
 0x1cf   :  { %451 = vtanh.f32 %v254_v42 }
 0x1d0   :  { %v258_v45 = vpop.f32.mrb[4].mxu1 }
 0x1d1   :  { %v259_v46 = vadd.f32 %v258_v45, %v166_v44  ;;  %v417_v47 = vpop.f32.mrb[5].mxu1 }
 0x1d3   :  { %453 = vtanh.f32 %v259_v46 }
 0x1d5   :  { %v450_v48 = vpop.eup %449 }
 0x1d9   :  { %v452_v49 = vpop.eup %451 }
 0x1da   :  { %v434_v50 = vpack.c.bf16 %v452_v49, %v450_v48 }
 0x1dc   :  { %435 = vmatpush3.bf16.msra.mxu0 %v434_v50 }
 0x1dd   :  { %422 = vmatprep.subr.mxu0 %v481_v5  ;;  %v454_v52 = vpop.eup %453 }
 0x1e0   :  { %423 = vmatpush3.msk.msra.mxu0 %vm178_vm2, %v454_v52 }
 0x1e1   :  { %425 = vmatmul.mubr.msk.f32.vlgmr.msra.gmra.mrb[6].mxu0 %vm168_vm3, %v37_v51 }
 0x2b4   :  { %v346_v58 = vpop.f32.mrb[6].mxu0 }
 0x2b5   :  { %v347_v59 = vadd.f32 %v346_v58, %v273_v57  ;;  %v426_v60 = vpop.f32.mrb[7].mxu0 }
 0x2b7   :  { %351 = vst.msk [vmem:[#allocation3] sm:$0x1] %vm350_vm4, %v347_v59 }
 0x2b8   :  { %466 = shalt.err (!%p463_p4)
}
 0x2b9   :  { %s467_s6 = scalar_lea.hbm %s616_s7, 16 }
 0x2ba   :  { %p468_p5 = scmp.ne.s32.totalorder %s616_s7, %s467_s6  ;;  %p471_p6 = scmp.lt.u32.totalorder %s467_s6, %s616_s7 }
 0x2bc   :  { %p473_p7 = pnand %p471_p6, %p468_p5 }
 0x2be   :  { %476 = shalt.err (!%p473_p7)
}
 0x2bf   :  { %361 = dma.vmem_to_hbm [thread:$0]  %s359_s28, 16, %s616_s7, [#allocation4]  }
 0x2c0   :  { %477 = dma.done.wait [#allocation4], 16  }
 0x2c1   :  { %478 = vsyncadd [#allocation4], 4294967280 }
 0x2c2   :  { %365 = vsyncpa [#allocation4], 1 }

</bundles_post_ra>
